<compile_context>
chip_gen: v6e
topology: v6e:2x2x1
jax: 0.10.0
libtpu: 0.0.40
codegen_flags: <defaults>
</compile_context>

<pallas_src>
import functools

import jax
import jax.numpy as jnp
from jax import lax
from jax.experimental import pallas as pl
from jax.experimental.pallas import tpu as pltpu

EPS = 1e-5
_VMEM_LIMIT = 56 * 1024 * 1024  # leaves headroom on v7x (64 MiB physical)


def _round_up(v, m):
    return (v + m - 1) // m * m


def _build_patch(f_ref, p_ref, H, W):
    """Build the shared 9-tap im2col patch (9*Cin_p, H*W) once per image.

    f_ref : Ref (1, Cin_p, L)  channel-padded, flat-spatially-padded input,
            L = H*W + 2W + 2 (W+1 zeros on each side of the flat HxW data).
    p_ref : VMEM scratch (9*Cin_p, H*W), tap index t = r*3 + (dc+1).
    """
    HW = H * W
    cin_p = f_ref.shape[1]
    dtype = p_ref.dtype
    # hoisted boundary masks (computed once; 6 of the 9 taps use one of them)
    col = lax.broadcasted_iota(jnp.int32, (1, HW), 1) % W
    m_left = col == 0           # tap column wrapped from previous row
    m_right = col == W - 1      # tap column wrapped into next row
    for r in (0, 1, 2):              # input row offset = r - 1
        for dc in (-1, 0, 1):        # input col offset
            t = r * 3 + (dc + 1)
            s = r * W + dc + 1       # static lane offset into the flat slab
            slab = f_ref[0, :, s:s + HW]          # (Cin_p, HW)
            if dc == -1:
                slab = jnp.where(m_left, 0.0, slab)
            elif dc == 1:
                slab = jnp.where(m_right, 0.0, slab)
            p_ref[t * cin_p:(t + 1) * cin_p, :] = slab.astype(dtype)


def _stats_kernel(f_ref, w_ref, sum_ref, m2_ref, p_ref, *, H, W):
    """Pass 1: fused conv matmul + per-row (image,parity,channel) sum and M2."""
    @pl.when(pl.program_id(1) == 0)     # patch shared by all cout-row tiles
    def _():
        _build_patch(f_ref, p_ref, H, W)

    y = jnp.dot(w_ref[...], p_ref[...], preferred_element_type=jnp.float32)
    s = jnp.sum(y, axis=1, keepdims=True)            # (rows, 1)
    mean = s * (1.0 / (H * W))                       # local pivot (no cancellation)
    d = y - mean
    m2 = jnp.sum(d * d, axis=1, keepdims=True)       # (rows, 1)
    sum_ref[0] = s
    m2_ref[0] = m2


def _apply_kernel(f_ref, w_ref, scale_ref, shift_ref, o_ref, p_ref, *, H, W):
    """Pass 2: fused conv matmul + folded BN affine + ReLU, lane-dense store."""
    @pl.when(pl.program_id(1) == 0)
    def _():
        _build_patch(f_ref, p_ref, H, W)

    y = jnp.dot(w_ref[...], p_ref[...], preferred_element_type=jnp.float32)
    o_ref[0] = jnp.maximum(y * scale_ref[...] + shift_ref[...], 0.0)


def up_conv_forward(x_nchw, w, b, gamma, beta, *,
                    mxu_dtype=jnp.float32, cout_tile_rows=512):
    """x_nchw: (N, Cin, H, W) f32; w: (3, 3, Cin, Cout); b/gamma/beta: (Cout,).

    Returns (N, Cout, 2H, 2W) f32, matching PyTorch up_conv.forward
    (Conv2d bias=True, BatchNorm2d in training mode -> batch statistics).
    mxu_dtype=jnp.bfloat16 is recommended on v6e/v7x at production sizes.
    """
    N, Cin, H, W = x_nchw.shape
    Cout = w.shape[-1]
    HW = H * W
    Cin_p = _round_up(Cin, 8)
    Cout_p = _round_up(Cout, 8)
    ROWS = 4 * Cout_p                 # parity-major output rows: p*Cout_p + o
    L = HW + 2 * W + 2

    # ---- fused 9-tap weights (the 2x nearest upsample is folded away) -------
    # A[a, r, kh]: which 3x3 kernel rows land on input-row offset r-1 for
    # output row parity a (identical matrix for columns, c = dc+1).
    A = jnp.array([[[1., 0., 0.], [0., 1., 1.], [0., 0., 0.]],
                   [[0., 0., 0.], [1., 1., 0.], [0., 0., 1.]]], jnp.float32)
    wf = jnp.einsum('arh,bcw,hwio->abrcoi', A, A, w.astype(jnp.float32))
    wf = jnp.transpose(wf, (0, 1, 4, 2, 3, 5)).reshape(4, Cout, 9, Cin)
    wf = jnp.pad(wf, ((0, 0), (0, Cout_p - Cout), (0, 0), (0, Cin_p - Cin)))
    w_fused = wf.reshape(ROWS, 9 * Cin_p).astype(mxu_dtype)

    # ---- single-pad input prep: channel-align pad + (W+1)-zero flat pad -----
    f = jnp.pad(x_nchw.reshape(N, Cin, HW),
                ((0, 0), (0, Cin_p - Cin), (W + 1, W + 1)))     # (N, Cin_p, L)

    # ---- Cout-row tiling (inner grid axis) -----------------------------------
    if ROWS <= cout_tile_rows or ROWS % cout_tile_rows != 0:
        tco = ROWS
    else:
        tco = cout_tile_rows
    nco = ROWS // tco

    f_spec = pl.BlockSpec((1, Cin_p, L), lambda n, c: (n, 0, 0))
    w_spec = pl.BlockSpec((tco, 9 * Cin_p), lambda n, c: (c, 0))
    stat_spec = pl.BlockSpec((1, tco, 1), lambda n, c: (n, c, 0))
    vec_spec = pl.BlockSpec((tco, 1), lambda n, c: (c, 0))
    out_spec = pl.BlockSpec((1, tco, HW), lambda n, c: (n, c, 0))
    scratch = [pltpu.VMEM((9 * Cin_p, HW), mxu_dtype)]
    cparams = pltpu.CompilerParams(
        dimension_semantics=("parallel", "arbitrary"),
        vmem_limit_bytes=_VMEM_LIMIT)

    # -------- pass 1: conv + per-(image,parity,channel) partial mean / M2 -----
    ssum, sm2 = pl.pallas_call(
        functools.partial(_stats_kernel, H=H, W=W),
        out_shape=(jax.ShapeDtypeStruct((N, ROWS, 1), jnp.float32),
                   jax.ShapeDtypeStruct((N, ROWS, 1), jnp.float32)),
        grid_spec=pltpu.PrefetchScalarGridSpec(
            num_scalar_prefetch=0, grid=(N, nco),
            in_specs=[f_spec, w_spec],
            out_specs=(stat_spec, stat_spec),
            scratch_shapes=scratch),
        compiler_params=cparams,
    )(f, w_fused)

    # Chan combine of the (N*4) per-row partials into per-channel batch stats.
    s = ssum[:, :, 0].reshape(N, 4, Cout_p)[:, :, :Cout]       # (N, 4, Cout)
    m2 = sm2[:, :, 0].reshape(N, 4, Cout_p)[:, :, :Cout]
    cnt_row = jnp.float32(HW)
    cnt_tot = jnp.float32(N * 4 * HW)                          # = N * 2H * 2W
    mean_row = s / cnt_row
    mu_conv = jnp.sum(s, axis=(0, 1)) / cnt_tot                # (Cout,) bias-free conv mean
    dev = mean_row - mu_conv
    var = (jnp.sum(m2, axis=(0, 1)) +
           cnt_row * jnp.sum(dev * dev, axis=(0, 1))) / cnt_tot  # biased batch var
    scale = gamma * lax.rsqrt(var + EPS)                       # (Cout,)
    shift = beta - mu_conv * scale       # conv bias cancels: mu = mu_conv + b

    scale4 = jnp.tile(jnp.pad(scale, (0, Cout_p - Cout)), 4).reshape(ROWS, 1)
    shift4 = jnp.tile(jnp.pad(shift, (0, Cout_p - Cout)), 4).reshape(ROWS, 1)

    # -------- pass 2: conv + folded BN affine + ReLU, lane-dense packed store --
    out_packed = pl.pallas_call(
        functools.partial(_apply_kernel, H=H, W=W),
        out_shape=jax.ShapeDtypeStruct((N, ROWS, HW), jnp.float32),
        grid_spec=pltpu.PrefetchScalarGridSpec(
            num_scalar_prefetch=0, grid=(N, nco),
            in_specs=[f_spec, w_spec, vec_spec, vec_spec],
            out_specs=out_spec,
            scratch_shapes=scratch),
        compiler_params=cparams,
    )(f, w_fused, scale4, shift4)

    # depth-to-space + channel-major unpack (one wrapper pass over the output)
    o = out_packed.reshape(N, 2, 2, Cout_p, H, W)[:, :, :, :Cout]
    out = jnp.transpose(o, (0, 3, 4, 1, 5, 2)).reshape(N, Cout, 2 * H, 2 * W)
    return out


def up_conv_reference(x_nchw, w, b, gamma, beta):
    """Pure-JAX reference matching PyTorch up_conv.forward (training-mode BN)."""
    x_up = jnp.repeat(jnp.repeat(x_nchw, 2, axis=2), 2, axis=3)
    w_oihw = jnp.transpose(w, (3, 2, 0, 1))
    y = lax.conv_general_dilated(
        x_up, w_oihw, window_strides=(1, 1), padding=((1, 1), (1, 1)),
        dimension_numbers=("NCHW", "OIHW", "NCHW"))
    y = y + b[None, :, None, None]
    mu = jnp.mean(y, axis=(0, 2, 3), keepdims=True)
    var = jnp.mean((y - mu) ** 2, axis=(0, 2, 3), keepdims=True)
    y = (y - mu) * lax.rsqrt(var + EPS)
    y = y * gamma[None, :, None, None] + beta[None, :, None, None]
    return jnp.maximum(y, 0.0)


if __name__ == "__main__":
    key = jax.random.PRNGKey(0)
    k_x, k_w, k_b, k_g, k_bt = jax.random.split(key, 5)

    N, Cin, Cout, Hs, Ws = 2, 4, 8, 16, 16
    x = jax.random.normal(k_x, (N, Cin, Hs, Ws), dtype=jnp.float32)
    w = 0.1 * jax.random.normal(k_w, (3, 3, Cin, Cout), dtype=jnp.float32)
    b = 0.1 * jax.random.normal(k_b, (Cout,), dtype=jnp.float32)
    gamma = 1.0 + 0.1 * jax.random.normal(k_g, (Cout,), dtype=jnp.float32)
    beta = 0.1 * jax.random.normal(k_bt, (Cout,), dtype=jnp.float32)

    out = jax.jit(up_conv_forward)(x, w, b, gamma, beta)
    jax.block_until_ready(out)

    ref = up_conv_reference(x, w, b, gamma, beta)
    assert out.shape == (N, Cout, 2 * Hs, 2 * Ws), out.shape
    err = float(jnp.max(jnp.abs(out - ref)))
    assert jnp.allclose(out, ref, atol=1e-3, rtol=1e-3), err

    print("KERNEL_OK")
</pallas_src>

<mosaic_0001>
module attributes {stable_mosaic.version = 11 : i64} {
  func.func @_stats_kernel(%arg0: i32, %arg1: i32, %arg2: memref<1x8x290xf32, #tpu.memory_space<vmem>>, %arg3: memref<32x72xf32, #tpu.memory_space<vmem>>, %arg4: memref<1x32x1xf32, #tpu.memory_space<vmem>>, %arg5: memref<1x32x1xf32, #tpu.memory_space<vmem>>, %arg6: memref<72x256xf32, #tpu.memory_space<vmem>>) attributes {dimension_semantics = [#tpu.dimension_semantics<parallel>, #tpu.dimension_semantics<arbitrary>], iteration_bounds = array<i64: 2, 1>, scalar_prefetch = 0 : i64, scratch_operands = 1 : i64, tpu.core_type = #tpu.core_type<tc>, window_params = [{transform_indices = @transform_0, window_bounds = array<i64: 1, 8, 290>}, {transform_indices = @transform_1, window_bounds = array<i64: 32, 72>}, {transform_indices = @transform_2, window_bounds = array<i64: 1, 32, 1>}, {transform_indices = @transform_3, window_bounds = array<i64: 1, 32, 1>}]} {
    %c0_i32 = arith.constant 0 : i32
    %0 = arith.cmpi eq, %arg1, %c0_i32 : i32
    %1 = arith.extui %0 : i1 to i32
    %c0_i32_0 = arith.constant 0 : i32
    %2 = arith.cmpi ne, %1, %c0_i32_0 : i32
    scf.if %2 {
      %21 = tpu.iota {dimensions = array<i32: 1>} : vector<1x256xi32>
      %c16_i32 = arith.constant 16 : i32
      %c0_i32_13 = arith.constant 0 : i32
      %22 = arith.cmpi eq, %c16_i32, %c0_i32_13 : i32
      %c1_i32 = arith.constant 1 : i32
      %23 = arith.select %22, %c1_i32, %c16_i32 : i32
      %24 = vector.broadcast %23 : i32 to vector<1x256xi32>
      %25 = arith.remsi %21, %24 : vector<1x256xi32>
      %c0_i32_14 = arith.constant 0 : i32
      %26 = vector.broadcast %c0_i32_14 : i32 to vector<1x256xi32>
      %27 = arith.cmpi ne, %25, %26 : vector<1x256xi32>
      %c0_i32_15 = arith.constant 0 : i32
      %28 = vector.broadcast %c0_i32_15 : i32 to vector<1x256xi32>
      %29 = arith.cmpi slt, %25, %28 : vector<1x256xi32>
      %c0_i32_16 = arith.constant 0 : i32
      %30 = arith.cmpi slt, %23, %c0_i32_16 : i32
      %31 = vector.broadcast %30 : i1 to vector<1x256xi1>
      %32 = vector.broadcast %31 : vector<1x256xi1> to vector<1x256xi1>
      %33 = arith.xori %29, %32 : vector<1x256xi1>
      %34 = arith.andi %33, %27 : vector<1x256xi1>
      %35 = vector.broadcast %23 : i32 to vector<1x256xi32>
      %36 = arith.addi %25, %35 : vector<1x256xi32>
      %37 = arith.select %34, %36, %25 : vector<1x256xi1>, vector<1x256xi32>
      %c0_i32_17 = arith.constant 0 : i32
      %38 = vector.broadcast %c0_i32_17 : i32 to vector<1x256xi32>
      %39 = arith.cmpi eq, %37, %38 : vector<1x256xi32>
      %c15_i32 = arith.constant 15 : i32
      %40 = vector.broadcast %c15_i32 : i32 to vector<1x256xi32>
      %41 = arith.cmpi eq, %37, %40 : vector<1x256xi32>
      %c0_18 = arith.constant 0 : index
      %c0_19 = arith.constant 0 : index
      %c0_20 = arith.constant 0 : index
      %42 = vector.load %arg2[%c0_18, %c0_19, %c0_20] : memref<1x8x290xf32, #tpu.memory_space<vmem>>, vector<1x8x256xf32>
      %43 = vector.shape_cast %42 : vector<1x8x256xf32> to vector<8x256xf32>
      %cst_21 = arith.constant 0.000000e+00 : f32
      %44 = vector.shape_cast %39 : vector<1x256xi1> to vector<1x256xi1>
      %45 = vector.broadcast %44 : vector<1x256xi1> to vector<8x256xi1>
      %46 = vector.broadcast %cst_21 : f32 to vector<8x256xf32>
      %47 = arith.select %45, %46, %43 : vector<8x256xi1>, vector<8x256xf32>
      %c0_22 = arith.constant 0 : index
      %c0_23 = arith.constant 0 : index
      %48 = vector.load %arg6[%c0_22, %c0_23] : memref<72x256xf32, #tpu.memory_space<vmem>>, vector<8x256xf32>
      tpu.vector_store %arg6[%c0_22, %c0_23], %47 {strides = array<i32>} : memref<72x256xf32, #tpu.memory_space<vmem>>, vector<8x256xf32>,
      %c0_24 = arith.constant 0 : index
      %c0_25 = arith.constant 0 : index
      %c1 = arith.constant 1 : index
      %49 = vector.load %arg2[%c0_24, %c0_25, %c1] : memref<1x8x290xf32, #tpu.memory_space<vmem>>, vector<1x8x256xf32>
      %50 = vector.shape_cast %49 : vector<1x8x256xf32> to vector<8x256xf32>
      %c8 = arith.constant 8 : index
      %c0_26 = arith.constant 0 : index
      %51 = vector.load %arg6[%c8, %c0_26] : memref<72x256xf32, #tpu.memory_space<vmem>>, vector<8x256xf32>
      tpu.vector_store %arg6[%c8, %c0_26], %50 {strides = array<i32>} : memref<72x256xf32, #tpu.memory_space<vmem>>, vector<8x256xf32>,
      %c0_27 = arith.constant 0 : index
      %c0_28 = arith.constant 0 : index
      %c2 = arith.constant 2 : index
      %52 = vector.load %arg2[%c0_27, %c0_28, %c2] : memref<1x8x290xf32, #tpu.memory_space<vmem>>, vector<1x8x256xf32>
      %53 = vector.shape_cast %52 : vector<1x8x256xf32> to vector<8x256xf32>
      %cst_29 = arith.constant 0.000000e+00 : f32
      %54 = vector.shape_cast %41 : vector<1x256xi1> to vector<1x256xi1>
      %55 = vector.broadcast %54 : vector<1x256xi1> to vector<8x256xi1>
      %56 = vector.broadcast %cst_29 : f32 to vector<8x256xf32>
      %57 = arith.select %55, %56, %53 : vector<8x256xi1>, vector<8x256xf32>
      %c16 = arith.constant 16 : index
      %c0_30 = arith.constant 0 : index
      %58 = vector.load %arg6[%c16, %c0_30] : memref<72x256xf32, #tpu.memory_space<vmem>>, vector<8x256xf32>
      tpu.vector_store %arg6[%c16, %c0_30], %57 {strides = array<i32>} : memref<72x256xf32, #tpu.memory_space<vmem>>, vector<8x256xf32>,
      %c0_31 = arith.constant 0 : index
      %c0_32 = arith.constant 0 : index
      %c16_33 = arith.constant 16 : index
      %59 = vector.load %arg2[%c0_31, %c0_32, %c16_33] : memref<1x8x290xf32, #tpu.memory_space<vmem>>, vector<1x8x256xf32>
      %60 = vector.shape_cast %59 : vector<1x8x256xf32> to vector<8x256xf32>
      %cst_34 = arith.constant 0.000000e+00 : f32
      %61 = vector.shape_cast %39 : vector<1x256xi1> to vector<1x256xi1>
      %62 = vector.broadcast %61 : vector<1x256xi1> to vector<8x256xi1>
      %63 = vector.broadcast %cst_34 : f32 to vector<8x256xf32>
      %64 = arith.select %62, %63, %60 : vector<8x256xi1>, vector<8x256xf32>
      %c24 = arith.constant 24 : index
      %c0_35 = arith.constant 0 : index
      %65 = vector.load %arg6[%c24, %c0_35] : memref<72x256xf32, #tpu.memory_space<vmem>>, vector<8x256xf32>
      tpu.vector_store %arg6[%c24, %c0_35], %64 {strides = array<i32>} : memref<72x256xf32, #tpu.memory_space<vmem>>, vector<8x256xf32>,
      %c0_36 = arith.constant 0 : index
      %c0_37 = arith.constant 0 : index
      %c17 = arith.constant 17 : index
      %66 = vector.load %arg2[%c0_36, %c0_37, %c17] : memref<1x8x290xf32, #tpu.memory_space<vmem>>, vector<1x8x256xf32>
      %67 = vector.shape_cast %66 : vector<1x8x256xf32> to vector<8x256xf32>
      %c32 = arith.constant 32 : index
      %c0_38 = arith.constant 0 : index
      %68 = vector.load %arg6[%c32, %c0_38] : memref<72x256xf32, #tpu.memory_space<vmem>>, vector<8x256xf32>
      tpu.vector_store %arg6[%c32, %c0_38], %67 {strides = array<i32>} : memref<72x256xf32, #tpu.memory_space<vmem>>, vector<8x256xf32>,
      %c0_39 = arith.constant 0 : index
      %c0_40 = arith.constant 0 : index
      %c18 = arith.constant 18 : index
      %69 = vector.load %arg2[%c0_39, %c0_40, %c18] : memref<1x8x290xf32, #tpu.memory_space<vmem>>, vector<1x8x256xf32>
      %70 = vector.shape_cast %69 : vector<1x8x256xf32> to vector<8x256xf32>
      %cst_41 = arith.constant 0.000000e+00 : f32
      %71 = vector.shape_cast %41 : vector<1x256xi1> to vector<1x256xi1>
      %72 = vector.broadcast %71 : vector<1x256xi1> to vector<8x256xi1>
      %73 = vector.broadcast %cst_41 : f32 to vector<8x256xf32>
      %74 = arith.select %72, %73, %70 : vector<8x256xi1>, vector<8x256xf32>
      %c40 = arith.constant 40 : index
      %c0_42 = arith.constant 0 : index
      %75 = vector.load %arg6[%c40, %c0_42] : memref<72x256xf32, #tpu.memory_space<vmem>>, vector<8x256xf32>
      tpu.vector_store %arg6[%c40, %c0_42], %74 {strides = array<i32>} : memref<72x256xf32, #tpu.memory_space<vmem>>, vector<8x256xf32>,
      %c0_43 = arith.constant 0 : index
      %c0_44 = arith.constant 0 : index
      %c32_45 = arith.constant 32 : index
      %76 = vector.load %arg2[%c0_43, %c0_44, %c32_45] : memref<1x8x290xf32, #tpu.memory_space<vmem>>, vector<1x8x256xf32>
      %77 = vector.shape_cast %76 : vector<1x8x256xf32> to vector<8x256xf32>
      %cst_46 = arith.constant 0.000000e+00 : f32
      %78 = vector.shape_cast %39 : vector<1x256xi1> to vector<1x256xi1>
      %79 = vector.broadcast %78 : vector<1x256xi1> to vector<8x256xi1>
      %80 = vector.broadcast %cst_46 : f32 to vector<8x256xf32>
      %81 = arith.select %79, %80, %77 : vector<8x256xi1>, vector<8x256xf32>
      %c48 = arith.constant 48 : index
      %c0_47 = arith.constant 0 : index
      %82 = vector.load %arg6[%c48, %c0_47] : memref<72x256xf32, #tpu.memory_space<vmem>>, vector<8x256xf32>
      tpu.vector_store %arg6[%c48, %c0_47], %81 {strides = array<i32>} : memref<72x256xf32, #tpu.memory_space<vmem>>, vector<8x256xf32>,
      %c0_48 = arith.constant 0 : index
      %c0_49 = arith.constant 0 : index
      %c33 = arith.constant 33 : index
      %83 = vector.load %arg2[%c0_48, %c0_49, %c33] : memref<1x8x290xf32, #tpu.memory_space<vmem>>, vector<1x8x256xf32>
      %84 = vector.shape_cast %83 : vector<1x8x256xf32> to vector<8x256xf32>
      %c56 = arith.constant 56 : index
      %c0_50 = arith.constant 0 : index
      %85 = vector.load %arg6[%c56, %c0_50] : memref<72x256xf32, #tpu.memory_space<vmem>>, vector<8x256xf32>
      tpu.vector_store %arg6[%c56, %c0_50], %84 {strides = array<i32>} : memref<72x256xf32, #tpu.memory_space<vmem>>, vector<8x256xf32>,
      %c0_51 = arith.constant 0 : index
      %c0_52 = arith.constant 0 : index
      %c34 = arith.constant 34 : index
      %86 = vector.load %arg2[%c0_51, %c0_52, %c34] : memref<1x8x290xf32, #tpu.memory_space<vmem>>, vector<1x8x256xf32>
      %87 = vector.shape_cast %86 : vector<1x8x256xf32> to vector<8x256xf32>
      %cst_53 = arith.constant 0.000000e+00 : f32
      %88 = vector.shape_cast %41 : vector<1x256xi1> to vector<1x256xi1>
      %89 = vector.broadcast %88 : vector<1x256xi1> to vector<8x256xi1>
      %90 = vector.broadcast %cst_53 : f32 to vector<8x256xf32>
      %91 = arith.select %89, %90, %87 : vector<8x256xi1>, vector<8x256xf32>
      %c64 = arith.constant 64 : index
      %c0_54 = arith.constant 0 : index
      %92 = vector.load %arg6[%c64, %c0_54] : memref<72x256xf32, #tpu.memory_space<vmem>>, vector<8x256xf32>
      tpu.vector_store %arg6[%c64, %c0_54], %91 {strides = array<i32>} : memref<72x256xf32, #tpu.memory_space<vmem>>, vector<8x256xf32>,
    } else {
    }
    %c0 = arith.constant 0 : index
    %c0_1 = arith.constant 0 : index
    %3 = vector.load %arg3[%c0, %c0_1] : memref<32x72xf32, #tpu.memory_space<vmem>>, vector<32x72xf32>
    %c0_2 = arith.constant 0 : index
    %c0_3 = arith.constant 0 : index
    %4 = vector.load %arg6[%c0_2, %c0_3] : memref<72x256xf32, #tpu.memory_space<vmem>>, vector<72x256xf32>
    %cst = arith.constant dense<0.000000e+00> : vector<32x256xf32>
    %5 = tpu.matmul %3, %4, %cst {dimension_numbers = #tpu.dot_dimension_numbers<[1], [0], [0], [1], [0, 0, 1, 1], [], []>} : vector<32x72xf32>, vector<72x256xf32>, vector<32x256xf32> -> vector<32x256xf32>
    %cst_4 = arith.constant dense<0.000000e+00> : vector<32xf32>
    %6 = vector.multi_reduction <add>, %5, %cst_4 [1] : vector<32x256xf32> to vector<32xf32>
    %7 = vector.shape_cast %6 : vector<32xf32> to vector<32x1xf32>
    %cst_5 = arith.constant 3.906250e-03 : f32
    %8 = vector.broadcast %cst_5 : f32 to vector<32x1xf32>
    %9 = arith.mulf %7, %8 : vector<32x1xf32>
    %10 = vector.broadcast %9 : vector<32x1xf32> to vector<32x256xf32>
    %11 = arith.subf %5, %10 : vector<32x256xf32>
    %12 = arith.mulf %11, %11 : vector<32x256xf32>
    %cst_6 = arith.constant dense<0.000000e+00> : vector<32xf32>
    %13 = vector.multi_reduction <add>, %12, %cst_6 [1] : vector<32x256xf32> to vector<32xf32>
    %14 = vector.shape_cast %13 : vector<32xf32> to vector<32x1xf32>
    %c0_7 = arith.constant 0 : index
    %c0_8 = arith.constant 0 : index
    %c0_9 = arith.constant 0 : index
    %15 = vector.load %arg4[%c0_7, %c0_8, %c0_9] : memref<1x32x1xf32, #tpu.memory_space<vmem>>, vector<1x32x1xf32>
    %16 = vector.shape_cast %15 : vector<1x32x1xf32> to vector<32x1xf32>
    %17 = vector.shape_cast %7 : vector<32x1xf32> to vector<1x32x1xf32>
    tpu.vector_store %arg4[%c0_7, %c0_8, %c0_9], %17 {strides = array<i32>} : memref<1x32x1xf32, #tpu.memory_space<vmem>>, vector<1x32x1xf32>,
    %c0_10 = arith.constant 0 : index
    %c0_11 = arith.constant 0 : index
    %c0_12 = arith.constant 0 : index
    %18 = vector.load %arg5[%c0_10, %c0_11, %c0_12] : memref<1x32x1xf32, #tpu.memory_space<vmem>>, vector<1x32x1xf32>
    %19 = vector.shape_cast %18 : vector<1x32x1xf32> to vector<32x1xf32>
    %20 = vector.shape_cast %14 : vector<32x1xf32> to vector<1x32x1xf32>
    tpu.vector_store %arg5[%c0_10, %c0_11, %c0_12], %20 {strides = array<i32>} : memref<1x32x1xf32, #tpu.memory_space<vmem>>, vector<1x32x1xf32>,
    return
  }
  func.func @transform_0(%arg0: i32, %arg1: i32) -> (i32, i32, i32) {
    %c0_i32 = arith.constant 0 : i32
    %c0_i32_0 = arith.constant 0 : i32
    %c0_i32_1 = arith.constant 0 : i32
    return %arg0, %c0_i32, %c0_i32_0 : i32, i32, i32
  }
  func.func @transform_1(%arg0: i32, %arg1: i32) -> (i32, i32) {
    %c0_i32 = arith.constant 0 : i32
    %c0_i32_0 = arith.constant 0 : i32
    return %arg1, %c0_i32 : i32, i32
  }
  func.func @transform_2(%arg0: i32, %arg1: i32) -> (i32, i32, i32) {
    %c0_i32 = arith.constant 0 : i32
    %c0_i32_0 = arith.constant 0 : i32
    return %arg0, %arg1, %c0_i32 : i32, i32, i32
  }
  func.func @transform_3(%arg0: i32, %arg1: i32) -> (i32, i32, i32) {
    %c0_i32 = arith.constant 0 : i32
    %c0_i32_0 = arith.constant 0 : i32
    return %arg0, %arg1, %c0_i32 : i32, i32, i32
  }
}

module attributes {stable_mosaic.version = 11 : i64} {
  func.func @_apply_kernel(%arg0: i32, %arg1: i32, %arg2: memref<1x8x290xf32, #tpu.memory_space<vmem>>, %arg3: memref<32x72xf32, #tpu.memory_space<vmem>>, %arg4: memref<32x1xf32, #tpu.memory_space<vmem>>, %arg5: memref<32x1xf32, #tpu.memory_space<vmem>>, %arg6: memref<1x32x256xf32, #tpu.memory_space<vmem>>, %arg7: memref<72x256xf32, #tpu.memory_space<vmem>>) attributes {dimension_semantics = [#tpu.dimension_semantics<parallel>, #tpu.dimension_semantics<arbitrary>], iteration_bounds = array<i64: 2, 1>, scalar_prefetch = 0 : i64, scratch_operands = 1 : i64, tpu.core_type = #tpu.core_type<tc>, window_params = [{transform_indices = @transform_0, window_bounds = array<i64: 1, 8, 290>}, {transform_indices = @transform_1, window_bounds = array<i64: 32, 72>}, {transform_indices = @transform_2, window_bounds = array<i64: 32, 1>}, {transform_indices = @transform_3, window_bounds = array<i64: 32, 1>}, {transform_indices = @transform_4, window_bounds = array<i64: 1, 32, 256>}]} {
    %c0_i32 = arith.constant 0 : i32
    %0 = arith.cmpi eq, %arg1, %c0_i32 : i32
    %1 = arith.extui %0 : i1 to i32
    %c0_i32_0 = arith.constant 0 : i32
    %2 = arith.cmpi ne, %1, %c0_i32_0 : i32
    scf.if %2 {
      %17 = tpu.iota {dimensions = array<i32: 1>} : vector<1x256xi32>
      %c16_i32 = arith.constant 16 : i32
      %c0_i32_12 = arith.constant 0 : i32
      %18 = arith.cmpi eq, %c16_i32, %c0_i32_12 : i32
      %c1_i32 = arith.constant 1 : i32
      %19 = arith.select %18, %c1_i32, %c16_i32 : i32
      %20 = vector.broadcast %19 : i32 to vector<1x256xi32>
      %21 = arith.remsi %17, %20 : vector<1x256xi32>
      %c0_i32_13 = arith.constant 0 : i32
      %22 = vector.broadcast %c0_i32_13 : i32 to vector<1x256xi32>
      %23 = arith.cmpi ne, %21, %22 : vector<1x256xi32>
      %c0_i32_14 = arith.constant 0 : i32
      %24 = vector.broadcast %c0_i32_14 : i32 to vector<1x256xi32>
      %25 = arith.cmpi slt, %21, %24 : vector<1x256xi32>
      %c0_i32_15 = arith.constant 0 : i32
      %26 = arith.cmpi slt, %19, %c0_i32_15 : i32
      %27 = vector.broadcast %26 : i1 to vector<1x256xi1>
      %28 = vector.broadcast %27 : vector<1x256xi1> to vector<1x256xi1>
      %29 = arith.xori %25, %28 : vector<1x256xi1>
      %30 = arith.andi %29, %23 : vector<1x256xi1>
      %31 = vector.broadcast %19 : i32 to vector<1x256xi32>
      %32 = arith.addi %21, %31 : vector<1x256xi32>
      %33 = arith.select %30, %32, %21 : vector<1x256xi1>, vector<1x256xi32>
      %c0_i32_16 = arith.constant 0 : i32
      %34 = vector.broadcast %c0_i32_16 : i32 to vector<1x256xi32>
      %35 = arith.cmpi eq, %33, %34 : vector<1x256xi32>
      %c15_i32 = arith.constant 15 : i32
      %36 = vector.broadcast %c15_i32 : i32 to vector<1x256xi32>
      %37 = arith.cmpi eq, %33, %36 : vector<1x256xi32>
      %c0_17 = arith.constant 0 : index
      %c0_18 = arith.constant 0 : index
      %c0_19 = arith.constant 0 : index
      %38 = vector.load %arg2[%c0_17, %c0_18, %c0_19] : memref<1x8x290xf32, #tpu.memory_space<vmem>>, vector<1x8x256xf32>
      %39 = vector.shape_cast %38 : vector<1x8x256xf32> to vector<8x256xf32>
      %cst_20 = arith.constant 0.000000e+00 : f32
      %40 = vector.shape_cast %35 : vector<1x256xi1> to vector<1x256xi1>
      %41 = vector.broadcast %40 : vector<1x256xi1> to vector<8x256xi1>
      %42 = vector.broadcast %cst_20 : f32 to vector<8x256xf32>
      %43 = arith.select %41, %42, %39 : vector<8x256xi1>, vector<8x256xf32>
      %c0_21 = arith.constant 0 : index
      %c0_22 = arith.constant 0 : index
      %44 = vector.load %arg7[%c0_21, %c0_22] : memref<72x256xf32, #tpu.memory_space<vmem>>, vector<8x256xf32>
      tpu.vector_store %arg7[%c0_21, %c0_22], %43 {strides = array<i32>} : memref<72x256xf32, #tpu.memory_space<vmem>>, vector<8x256xf32>,
      %c0_23 = arith.constant 0 : index
      %c0_24 = arith.constant 0 : index
      %c1 = arith.constant 1 : index
      %45 = vector.load %arg2[%c0_23, %c0_24, %c1] : memref<1x8x290xf32, #tpu.memory_space<vmem>>, vector<1x8x256xf32>
      %46 = vector.shape_cast %45 : vector<1x8x256xf32> to vector<8x256xf32>
      %c8 = arith.constant 8 : index
      %c0_25 = arith.constant 0 : index
      %47 = vector.load %arg7[%c8, %c0_25] : memref<72x256xf32, #tpu.memory_space<vmem>>, vector<8x256xf32>
      tpu.vector_store %arg7[%c8, %c0_25], %46 {strides = array<i32>} : memref<72x256xf32, #tpu.memory_space<vmem>>, vector<8x256xf32>,
      %c0_26 = arith.constant 0 : index
      %c0_27 = arith.constant 0 : index
      %c2 = arith.constant 2 : index
      %48 = vector.load %arg2[%c0_26, %c0_27, %c2] : memref<1x8x290xf32, #tpu.memory_space<vmem>>, vector<1x8x256xf32>
      %49 = vector.shape_cast %48 : vector<1x8x256xf32> to vector<8x256xf32>
      %cst_28 = arith.constant 0.000000e+00 : f32
      %50 = vector.shape_cast %37 : vector<1x256xi1> to vector<1x256xi1>
      %51 = vector.broadcast %50 : vector<1x256xi1> to vector<8x256xi1>
      %52 = vector.broadcast %cst_28 : f32 to vector<8x256xf32>
      %53 = arith.select %51, %52, %49 : vector<8x256xi1>, vector<8x256xf32>
      %c16 = arith.constant 16 : index
      %c0_29 = arith.constant 0 : index
      %54 = vector.load %arg7[%c16, %c0_29] : memref<72x256xf32, #tpu.memory_space<vmem>>, vector<8x256xf32>
      tpu.vector_store %arg7[%c16, %c0_29], %53 {strides = array<i32>} : memref<72x256xf32, #tpu.memory_space<vmem>>, vector<8x256xf32>,
      %c0_30 = arith.constant 0 : index
      %c0_31 = arith.constant 0 : index
      %c16_32 = arith.constant 16 : index
      %55 = vector.load %arg2[%c0_30, %c0_31, %c16_32] : memref<1x8x290xf32, #tpu.memory_space<vmem>>, vector<1x8x256xf32>
      %56 = vector.shape_cast %55 : vector<1x8x256xf32> to vector<8x256xf32>
      %cst_33 = arith.constant 0.000000e+00 : f32
      %57 = vector.shape_cast %35 : vector<1x256xi1> to vector<1x256xi1>
      %58 = vector.broadcast %57 : vector<1x256xi1> to vector<8x256xi1>
      %59 = vector.broadcast %cst_33 : f32 to vector<8x256xf32>
      %60 = arith.select %58, %59, %56 : vector<8x256xi1>, vector<8x256xf32>
      %c24 = arith.constant 24 : index
      %c0_34 = arith.constant 0 : index
      %61 = vector.load %arg7[%c24, %c0_34] : memref<72x256xf32, #tpu.memory_space<vmem>>, vector<8x256xf32>
      tpu.vector_store %arg7[%c24, %c0_34], %60 {strides = array<i32>} : memref<72x256xf32, #tpu.memory_space<vmem>>, vector<8x256xf32>,
      %c0_35 = arith.constant 0 : index
      %c0_36 = arith.constant 0 : index
      %c17 = arith.constant 17 : index
      %62 = vector.load %arg2[%c0_35, %c0_36, %c17] : memref<1x8x290xf32, #tpu.memory_space<vmem>>, vector<1x8x256xf32>
      %63 = vector.shape_cast %62 : vector<1x8x256xf32> to vector<8x256xf32>
      %c32 = arith.constant 32 : index
      %c0_37 = arith.constant 0 : index
      %64 = vector.load %arg7[%c32, %c0_37] : memref<72x256xf32, #tpu.memory_space<vmem>>, vector<8x256xf32>
      tpu.vector_store %arg7[%c32, %c0_37], %63 {strides = array<i32>} : memref<72x256xf32, #tpu.memory_space<vmem>>, vector<8x256xf32>,
      %c0_38 = arith.constant 0 : index
      %c0_39 = arith.constant 0 : index
      %c18 = arith.constant 18 : index
      %65 = vector.load %arg2[%c0_38, %c0_39, %c18] : memref<1x8x290xf32, #tpu.memory_space<vmem>>, vector<1x8x256xf32>
      %66 = vector.shape_cast %65 : vector<1x8x256xf32> to vector<8x256xf32>
      %cst_40 = arith.constant 0.000000e+00 : f32
      %67 = vector.shape_cast %37 : vector<1x256xi1> to vector<1x256xi1>
      %68 = vector.broadcast %67 : vector<1x256xi1> to vector<8x256xi1>
      %69 = vector.broadcast %cst_40 : f32 to vector<8x256xf32>
      %70 = arith.select %68, %69, %66 : vector<8x256xi1>, vector<8x256xf32>
      %c40 = arith.constant 40 : index
      %c0_41 = arith.constant 0 : index
      %71 = vector.load %arg7[%c40, %c0_41] : memref<72x256xf32, #tpu.memory_space<vmem>>, vector<8x256xf32>
      tpu.vector_store %arg7[%c40, %c0_41], %70 {strides = array<i32>} : memref<72x256xf32, #tpu.memory_space<vmem>>, vector<8x256xf32>,
      %c0_42 = arith.constant 0 : index
      %c0_43 = arith.constant 0 : index
      %c32_44 = arith.constant 32 : index
      %72 = vector.load %arg2[%c0_42, %c0_43, %c32_44] : memref<1x8x290xf32, #tpu.memory_space<vmem>>, vector<1x8x256xf32>
      %73 = vector.shape_cast %72 : vector<1x8x256xf32> to vector<8x256xf32>
      %cst_45 = arith.constant 0.000000e+00 : f32
      %74 = vector.shape_cast %35 : vector<1x256xi1> to vector<1x256xi1>
      %75 = vector.broadcast %74 : vector<1x256xi1> to vector<8x256xi1>
      %76 = vector.broadcast %cst_45 : f32 to vector<8x256xf32>
      %77 = arith.select %75, %76, %73 : vector<8x256xi1>, vector<8x256xf32>
      %c48 = arith.constant 48 : index
      %c0_46 = arith.constant 0 : index
      %78 = vector.load %arg7[%c48, %c0_46] : memref<72x256xf32, #tpu.memory_space<vmem>>, vector<8x256xf32>
      tpu.vector_store %arg7[%c48, %c0_46], %77 {strides = array<i32>} : memref<72x256xf32, #tpu.memory_space<vmem>>, vector<8x256xf32>,
      %c0_47 = arith.constant 0 : index
      %c0_48 = arith.constant 0 : index
      %c33 = arith.constant 33 : index
      %79 = vector.load %arg2[%c0_47, %c0_48, %c33] : memref<1x8x290xf32, #tpu.memory_space<vmem>>, vector<1x8x256xf32>
      %80 = vector.shape_cast %79 : vector<1x8x256xf32> to vector<8x256xf32>
      %c56 = arith.constant 56 : index
      %c0_49 = arith.constant 0 : index
      %81 = vector.load %arg7[%c56, %c0_49] : memref<72x256xf32, #tpu.memory_space<vmem>>, vector<8x256xf32>
      tpu.vector_store %arg7[%c56, %c0_49], %80 {strides = array<i32>} : memref<72x256xf32, #tpu.memory_space<vmem>>, vector<8x256xf32>,
      %c0_50 = arith.constant 0 : index
      %c0_51 = arith.constant 0 : index
      %c34 = arith.constant 34 : index
      %82 = vector.load %arg2[%c0_50, %c0_51, %c34] : memref<1x8x290xf32, #tpu.memory_space<vmem>>, vector<1x8x256xf32>
      %83 = vector.shape_cast %82 : vector<1x8x256xf32> to vector<8x256xf32>
      %cst_52 = arith.constant 0.000000e+00 : f32
      %84 = vector.shape_cast %37 : vector<1x256xi1> to vector<1x256xi1>
      %85 = vector.broadcast %84 : vector<1x256xi1> to vector<8x256xi1>
      %86 = vector.broadcast %cst_52 : f32 to vector<8x256xf32>
      %87 = arith.select %85, %86, %83 : vector<8x256xi1>, vector<8x256xf32>
      %c64 = arith.constant 64 : index
      %c0_53 = arith.constant 0 : index
      %88 = vector.load %arg7[%c64, %c0_53] : memref<72x256xf32, #tpu.memory_space<vmem>>, vector<8x256xf32>
      tpu.vector_store %arg7[%c64, %c0_53], %87 {strides = array<i32>} : memref<72x256xf32, #tpu.memory_space<vmem>>, vector<8x256xf32>,
    } else {
    }
    %c0 = arith.constant 0 : index
    %c0_1 = arith.constant 0 : index
    %3 = vector.load %arg3[%c0, %c0_1] : memref<32x72xf32, #tpu.memory_space<vmem>>, vector<32x72xf32>
    %c0_2 = arith.constant 0 : index
    %c0_3 = arith.constant 0 : index
    %4 = vector.load %arg7[%c0_2, %c0_3] : memref<72x256xf32, #tpu.memory_space<vmem>>, vector<72x256xf32>
    %cst = arith.constant dense<0.000000e+00> : vector<32x256xf32>
    %5 = tpu.matmul %3, %4, %cst {dimension_numbers = #tpu.dot_dimension_numbers<[1], [0], [0], [1], [0, 0, 1, 1], [], []>} : vector<32x72xf32>, vector<72x256xf32>, vector<32x256xf32> -> vector<32x256xf32>
    %c0_4 = arith.constant 0 : index
    %c0_5 = arith.constant 0 : index
    %6 = vector.load %arg4[%c0_4, %c0_5] : memref<32x1xf32, #tpu.memory_space<vmem>>, vector<32x1xf32>
    %7 = vector.broadcast %6 : vector<32x1xf32> to vector<32x256xf32>
    %8 = arith.mulf %5, %7 : vector<32x256xf32>
    %c0_6 = arith.constant 0 : index
    %c0_7 = arith.constant 0 : index
    %9 = vector.load %arg5[%c0_6, %c0_7] : memref<32x1xf32, #tpu.memory_space<vmem>>, vector<32x1xf32>
    %10 = vector.broadcast %9 : vector<32x1xf32> to vector<32x256xf32>
    %11 = arith.addf %8, %10 : vector<32x256xf32>
    %cst_8 = arith.constant 0.000000e+00 : f32
    %12 = vector.broadcast %cst_8 : f32 to vector<32x256xf32>
    %13 = arith.maximumf %11, %12 : vector<32x256xf32>
    %c0_9 = arith.constant 0 : index
    %c0_10 = arith.constant 0 : index
    %c0_11 = arith.constant 0 : index
    %14 = vector.load %arg6[%c0_9, %c0_10, %c0_11] : memref<1x32x256xf32, #tpu.memory_space<vmem>>, vector<1x32x256xf32>
    %15 = vector.shape_cast %14 : vector<1x32x256xf32> to vector<32x256xf32>
    %16 = vector.shape_cast %13 : vector<32x256xf32> to vector<1x32x256xf32>
    tpu.vector_store %arg6[%c0_9, %c0_10, %c0_11], %16 {strides = array<i32>} : memref<1x32x256xf32, #tpu.memory_space<vmem>>, vector<1x32x256xf32>,
    return
  }
  func.func @transform_0(%arg0: i32, %arg1: i32) -> (i32, i32, i32) {
    %c0_i32 = arith.constant 0 : i32
    %c0_i32_0 = arith.constant 0 : i32
    %c0_i32_1 = arith.constant 0 : i32
    return %arg0, %c0_i32, %c0_i32_0 : i32, i32, i32
  }
  func.func @transform_1(%arg0: i32, %arg1: i32) -> (i32, i32) {
    %c0_i32 = arith.constant 0 : i32
    %c0_i32_0 = arith.constant 0 : i32
    return %arg1, %c0_i32 : i32, i32
  }
  func.func @transform_2(%arg0: i32, %arg1: i32) -> (i32, i32) {
    %c0_i32 = arith.constant 0 : i32
    %c0_i32_0 = arith.constant 0 : i32
    return %arg1, %c0_i32 : i32, i32
  }
  func.func @transform_3(%arg0: i32, %arg1: i32) -> (i32, i32) {
    %c0_i32 = arith.constant 0 : i32
    %c0_i32_0 = arith.constant 0 : i32
    return %arg1, %c0_i32 : i32, i32
  }
  func.func @transform_4(%arg0: i32, %arg1: i32) -> (i32, i32, i32) {
    %c0_i32 = arith.constant 0 : i32
    %c0_i32_0 = arith.constant 0 : i32
    return %arg0, %arg1, %c0_i32 : i32, i32, i32
  }
}

</mosaic_0001>

<bundles_post_ra>
// kernel: tile.0
= control target key start
LH: loop header
LB: loop body
LE: loop exit
PB: predicated region body
PF: predicated region fallthrough
CT: control target
= control target key end

     0   :  { %s67_s8 = smov 125   ;;  %vm8_vm0 = vcmask 7168   ;;  %s68_s11 = smov 126   ;;  %s118_s0 = inlined_call_operand.vmem [shape: f32[4,8], index: 0, kind: input, shape index: {}]   ;;  %s119_s1 = inlined_call_operand.vmem [shape: f32[32,1], index: 1, kind: output, shape index: {}]  }
   0x1   :  { %v5_v0 = vld [vmem:[%s118_s0] sm:$0xf]  ;;  %s66_s0 = smov 127   ;;  %s69_s12 = smov 124  }
   0x2   :  { %6 = vst [vmem:[#allocation0] sm:$0xf] %v5_v0  ;;  %s70_s13 = smov 123   ;;  %s71_s14 = smov 122  }
   0x3   :  { %s72_s15 = smov 121  }
   0x9   :  { %v10_v1 = vld [vmem:[#allocation0] sm:$0xf]  }
   0xa   :  { %v22_v2 = vld [vmem:[#allocation0] sm:$0xf]   ;;  %11 = vrot.lane.b32.xlu0 %v10_v1, %s66_s0 }
   0xb   :  { %23 = vrot.lane.b32.xlu1 %v22_v2, %s67_s8  ;;  %v16_v3 = vld [vmem:[#allocation0] sm:$0xf]  }
   0xc   :  { %v28_v4 = vld [vmem:[#allocation0] sm:$0xf]  }
   0xd   :  { %v7_v5 = vld [vmem:[#allocation0] sm:$0xf]  }
   0xe   :  { %9 = vst.msk [vmem:[%s119_s1] ss:$8 sm:$0xf] %vm8_vm0, %v7_v5   ;;  %17 = vrot.lane.b32.xlu0 %v16_v3, %s68_s11  ;;  %v34_v6 = vld [vmem:[#allocation0] sm:$0xf]  }
   0xf   :  { %29 = vrot.lane.b32.xlu1 %v28_v4, %s69_s12  ;;  %v40_v7 = vld [vmem:[#allocation0] sm:$0xf]  }
  0x10   :  { %v46_v8 = vld [vmem:[#allocation0] sm:$0xf]  }
  0x12   :  { %35 = vrot.lane.b32.xlu0 %v34_v6, %s70_s13 }
  0x13   :  { %41 = vrot.lane.b32.xlu1 %v40_v7, %s71_s14 }
  0x16   :  { %47 = vrot.lane.b32.xlu0 %v46_v8, %s72_s15 }
  0x7c   :  { %v12_v9 = vpop.permute.xlu0 %11  }
  0x7d   :  { %v24_v10 = vpop.permute.xlu1 %23   ;;  %52 = vst.msk [vmem:[%s119_s1 + $0x1] ss:$8 sm:$0xf] %vm8_vm0, %v12_v9  }
  0x7e   :  { %54 = vst.msk [vmem:[%s119_s1 + $0x3] ss:$8 sm:$0xf] %vm8_vm0, %v24_v10  }
  0x80   :  { %v18_v11 = vpop.permute.xlu0 %17  }
  0x81   :  { %v30_v12 = vpop.permute.xlu1 %29   ;;  %53 = vst.msk [vmem:[%s119_s1 + $0x2] ss:$8 sm:$0xf] %vm8_vm0, %v18_v11  }
  0x82   :  { %55 = vst.msk [vmem:[%s119_s1 + $0x4] ss:$8 sm:$0xf] %vm8_vm0, %v30_v12  }
  0x84   :  { %v36_v13 = vpop.permute.xlu0 %35  }
  0x85   :  { %v42_v14 = vpop.permute.xlu1 %41   ;;  %56 = vst.msk [vmem:[%s119_s1 + $0x5] ss:$8 sm:$0xf] %vm8_vm0, %v36_v13  }
  0x86   :  { %57 = vst.msk [vmem:[%s119_s1 + $0x6] ss:$8 sm:$0xf] %vm8_vm0, %v42_v14  }
  0x88   :  { %v48_v15 = vpop.permute.xlu0 %47  }
  0x89   :  { %58 = vst.msk [vmem:[%s119_s1 + $0x7] ss:$8 sm:$0xf] %vm8_vm0, %v48_v15  }

// kernel: up_conv_forward.2
= control target key start
LH: loop header
LB: loop body
LE: loop exit
PB: predicated region body
PF: predicated region fallthrough
CT: control target
= control target key end

     0   :  { %s926_s12 = smov 0   ;;  %s928_s13 = smov 0   ;;  %s1093_s0 = inlined_call_operand.vmem [shape: f32[2,8,290], index: 0, kind: input, shape index: {}]   ;;  %s1094_s1 = inlined_call_operand.vmem [shape: f32[32,72], index: 1, kind: input, shape index: {}]   ;;  %s1095_s2 = inlined_call_operand.vmem [shape: f32[2,32,1], index: 2, kind: output, shape index: {0}]   ;;  %s1096_s3 = inlined_call_operand.vmem [shape: f32[2,32,1], index: 3, kind: output, shape index: {1}]  }
   0x1   :  { %s930_s14 = smov 0  }
   0x2 LB: > { %s26_s15 = sadd.s32 1, %s891_s13  ;;  %p779_p0 = scmp.ge.s32.totalorder %s895_s14, 1  ;;  %s895_s14 = sphi %s930_s14, %s14_s14   ;;  %s891_s13 = sphi %s928_s13, %s1106_s13   ;;  %s887_s12 = sphi %s926_s12, %s1105_s12  }
   0x3   : > { %p28_p1 = scmp.ge.s32.totalorder %s26_s15, 2  ;;  %p167_p2 = scmp.lt.s32.totalorder %s895_s14, 3 }
   0x5   : > { %s1108_s15 = smov (%p28_p1, %s26_s15), 0  ;;  %p168_p3 = pnand %p779_p0, %p167_p2 }
   0x6   : > { %p209_p4 = scmp.lt.s32.totalorder (!%p168_p3), %s887_s12, 1  ;;  %s897_s20 = smov (!%p168_p3), 94  }
   0x7   : > { %171 = sbr.rel (%p168_p3) target bundleno = 672 (0x2a0), region = 28  ;;  %s898_s21 = smov (!%p168_p3), 95  }
   0x8   : > { %s899_s22 = smov (!%p168_p3), 96   ;;  %s900_s23 = smov (!%p168_p3), 110  }
   0x9   : > { %s901_s24 = smov (!%p168_p3), 111   ;;  %s902_s25 = smov (!%p168_p3), 112  }
   0xa   : > { %s904_s26 = smov (!%p168_p3), 126   ;;  %s905_s27 = smov (!%p168_p3), 127  }
   0xc   : > { %v244_v0 = vlaneseq  ;;  %s1110_s12 = smov (!%p209_p4, %s887_s12), 1  ;;  %v903_v8 = vmov 0.0   ;;  %vm442_vm0 = vcmask 769024   ;;  %vm423_vm3 = vcmask 777216   ;;  %v451_v53 = vld [vmem:[%s1094_s1] sm:$0xff]  ;;  %v453_v54 = vld [vmem:[%s1094_s1 + $0x10] sm:$0xff] }
   0xd   : > { %s835_s16 = smul.u32 24, %s1110_s12  ;;  %550 = vmatprep.mubr.f32.mxu0 %v903_v8  ;;  %562 = vmatprep.mubr.f32.mxu1 %v903_v8  ;;  %vm402_vm4 = vcmask 785408   ;;  %vm381_vm7 = vcmask 900096   ;;  %vm362_vm8 = vcmask 908288   ;;  %vm341_vm9 = vcmask 916480   ;;  %v452_v55 = vld [vmem:[%s1094_s1 + $0x8] sm:$0xff] }
   0xe   : > { %v946_v1 = vand.u32 127, %v244_v0  ;;  %vm320_vm10 = vcmask 1031168   ;;  %vm297_vm11 = vcmask 1039360   ;;  %vm473_vm12 = vcmask 588800   ;;  %v454_v56 = vld [vmem:[%s1094_s1 + $0x18] sm:$0xff]  ;;  %s791_s9 = sshll.u32 %s1110_s12, 5 }
   0xf   : > { %s213_s19 = scalar_lea.vmem %s1093_s0, %s835_s16  ;;  %s228_s16 = scalar_lea.vmem %s1095_s2, %s791_s9  ;;  %vm619_vm13 = vcmask 7168  }
  0x10   : > { %v950_v2 = vadd.s32 128, %v946_v1  ;;  %v251_v3 = vand.u32 15, %v946_v1  ;;  %v957_v5 = vld [vmem:[%s213_s19 + $0x8] sm:$0xff]  ;;  %v959_v6 = vld [vmem:[%s213_s19] sm:$0xff]  ;;  %v432_v7 = vld [vmem:[%s213_s19 + $0x10] sm:$0xff]  ;;  %s238_s19 = scalar_lea.vmem %s1096_s3, %s791_s9 }
  0x11   : > { %438 = vrot.lane.b32.xlu0 %v957_v5, %s897_s20  ;;  %436 = vrot.lane.b32.xlu1 %v959_v6, %s897_s20 }
  0x12   : > { %v258_v4 = vand.u32 15, %v950_v2  ;;  %vm985_vm2 = vcmp.ne.s32.totalorder %v251_v3, 15  ;;  %vm1007_vm6 = vcmp.ne.s32.totalorder %v251_v3, 0 }
  0x14   : > { %vm979_vm1 = vcmp.ne.s32.totalorder %v258_v4, 15  ;;  %vm997_vm5 = vcmp.ne.s32.totalorder %v258_v4, 0 }
  0x15   : > { %440 = vrot.lane.b32.xlu0 %v432_v7, %s897_s20  ;;  %419 = vrot.lane.b32.xlu1 %v957_v5, %s898_s21 }
  0x19   : > { %421 = vrot.lane.b32.xlu0 %v432_v7, %s898_s21  ;;  %417 = vrot.lane.b32.xlu1 %v959_v6, %s898_s21 }
  0x1d   : > { %400 = vrot.lane.b32.xlu1 %v432_v7, %s899_s22  ;;  %398 = vrot.lane.b32.xlu0 %v957_v5, %s899_s22 }
  0x21   : > { %396 = vrot.lane.b32.xlu0 %v959_v6, %s899_s22  ;;  %377 = vrot.lane.b32.xlu1 %v957_v5, %s900_s23 }
  0x25   : > { %379 = vrot.lane.b32.xlu0 %v432_v7, %s900_s23  ;;  %375 = vrot.lane.b32.xlu1 %v959_v6, %s900_s23 }
  0x29   : > { %360 = vrot.lane.b32.xlu1 %v432_v7, %s901_s24  ;;  %358 = vrot.lane.b32.xlu0 %v957_v5, %s901_s24 }
  0x2d   : > { %356 = vrot.lane.b32.xlu0 %v959_v6, %s901_s24  ;;  %337 = vrot.lane.b32.xlu1 %v957_v5, %s902_s25 }
  0x31   : > { %339 = vrot.lane.b32.xlu0 %v432_v7, %s902_s25  ;;  %335 = vrot.lane.b32.xlu1 %v959_v6, %s902_s25 }
  0x35   : > { %318 = vrot.lane.b32.xlu1 %v432_v7, %s904_s26  ;;  %316 = vrot.lane.b32.xlu0 %v957_v5, %s904_s26 }
  0x39   : > { %314 = vrot.lane.b32.xlu0 %v959_v6, %s904_s26  ;;  %293 = vrot.lane.b32.xlu1 %v957_v5, %s905_s27 }
  0x3d   : > { %295 = vrot.lane.b32.xlu0 %v432_v7, %s905_s27  ;;  %291 = vrot.lane.b32.xlu1 %v959_v6, %s905_s27 }
  0x83   : > { %v439_v9 = vpop.permute.xlu0 %438  ;;  %v437_v10 = vpop.permute.xlu1 %436 }
  0x84   : > { %v443_v16 = vsel %vm442_vm0, %v437_v10, %v439_v9 }
  0x87   : > { %v441_v12 = vpop.permute.xlu0 %440  ;;  %v420_v13 = vpop.permute.xlu1 %419 }
  0x88   : > { %v444_v15 = vsel %vm442_vm0, %v439_v9, %v441_v12 }
  0x89   : > { %794 = vmatprep.subr.msk.mxu0 %vm979_vm1, %v444_v15  ;;  %817 = vmatprep.subr.msk.mxu1 %vm979_vm1, %v444_v15 }
  0x8a   : > { %796 = vmatpush1.msk.msra.mxu0 %vm985_vm2, %v443_v16  ;;  %826 = vmatpush1.msk.msra.mxu1 %vm985_vm2, %v443_v16 }
  0x8b   : > { %v422_v17 = vpop.permute.xlu0 %421  ;;  %v418_v18 = vpop.permute.xlu1 %417 }
  0x8c   : > { %v425_v19 = vsel %vm423_vm3, %v420_v13, %v422_v17  ;;  %v424_v20 = vsel %vm423_vm3, %v418_v18, %v420_v13 }
  0x8d   : > { %502 = vmatprep.subr.mxu0 %v425_v19  ;;  %818 = vmatprep.subr.mxu1 %v425_v19 }
  0x8e   : > { %503 = vmatpush1.msra.mxu0 %v424_v20  ;;  %827 = vmatpush1.msra.mxu1 %v424_v20 }
  0x8f   : > { %v401_v22 = vpop.permute.xlu1 %400  ;;  %v399_v23 = vpop.permute.xlu0 %398 }
  0x90   : > { %v404_v24 = vsel %vm402_vm4, %v399_v23, %v401_v22 }
  0x91   : > { %798 = vmatprep.subr.msk.mxu0 %vm997_vm5, %v404_v24  ;;  %819 = vmatprep.subr.msk.mxu1 %vm997_vm5, %v404_v24 }
  0x93   : > { %v397_v26 = vpop.permute.xlu0 %396  ;;  %v378_v27 = vpop.permute.xlu1 %377 }
  0x94   : > { %v403_v28 = vsel %vm402_vm4, %v397_v26, %v399_v23 }
  0x95   : > { %800 = vmatpush1.msk.msra.mxu0 %vm1007_vm6, %v403_v28  ;;  %828 = vmatpush1.msk.msra.mxu1 %vm1007_vm6, %v403_v28 }
  0x97   : > { %v380_v29 = vpop.permute.xlu0 %379  ;;  %v376_v30 = vpop.permute.xlu1 %375 }
  0x98   : > { %v383_v31 = vsel %vm381_vm7, %v378_v27, %v380_v29  ;;  %v382_v32 = vsel %vm381_vm7, %v376_v30, %v378_v27 }
  0x99   : > { %802 = vmatprep.subr.msk.mxu0 %vm979_vm1, %v383_v31  ;;  %820 = vmatprep.subr.msk.mxu1 %vm979_vm1, %v383_v31 }
  0x9a   : > { %804 = vmatpush1.msk.msra.mxu0 %vm985_vm2, %v382_v32  ;;  %829 = vmatpush1.msk.msra.mxu1 %vm985_vm2, %v382_v32 }
  0x9b   : > { %v361_v33 = vpop.permute.xlu1 %360  ;;  %v359_v34 = vpop.permute.xlu0 %358 }
  0x9c   : > { %v364_v35 = vsel %vm362_vm8, %v359_v34, %v361_v33 }
  0x9d   : > { %508 = vmatprep.subr.mxu0 %v364_v35  ;;  %821 = vmatprep.subr.mxu1 %v364_v35 }
  0x9f   : > { %v357_v36 = vpop.permute.xlu0 %356  ;;  %v338_v37 = vpop.permute.xlu1 %337 }
  0xa0   : > { %v363_v38 = vsel %vm362_vm8, %v357_v36, %v359_v34 }
  0xa1   : > { %509 = vmatpush1.msra.mxu0 %v363_v38  ;;  %830 = vmatpush1.msra.mxu1 %v363_v38 }
  0xa3   : > { %v340_v39 = vpop.permute.xlu0 %339  ;;  %v336_v40 = vpop.permute.xlu1 %335 }
  0xa4   : > { %v343_v41 = vsel %vm341_vm9, %v338_v37, %v340_v39  ;;  %v342_v42 = vsel %vm341_vm9, %v336_v40, %v338_v37 }
  0xa5   : > { %806 = vmatprep.subr.msk.mxu0 %vm997_vm5, %v343_v41  ;;  %822 = vmatprep.subr.msk.mxu1 %vm997_vm5, %v343_v41 }
  0xa6   : > { %808 = vmatpush1.msk.msra.mxu0 %vm1007_vm6, %v342_v42  ;;  %831 = vmatpush1.msk.msra.mxu1 %vm1007_vm6, %v342_v42 }
  0xa7   : > { %v319_v43 = vpop.permute.xlu1 %318  ;;  %v317_v44 = vpop.permute.xlu0 %316 }
  0xa8   : > { %v322_v45 = vsel %vm320_vm10, %v317_v44, %v319_v43 }
  0xa9   : > { %810 = vmatprep.subr.msk.mxu0 %vm979_vm1, %v322_v45  ;;  %823 = vmatprep.subr.msk.mxu1 %vm979_vm1, %v322_v45 }
  0xab   : > { %v315_v46 = vpop.permute.xlu0 %314  ;;  %v294_v47 = vpop.permute.xlu1 %293 }
  0xac   : > { %v321_v48 = vsel %vm320_vm10, %v315_v46, %v317_v44 }
  0xad   : > { %812 = vmatpush1.msk.msra.mxu0 %vm985_vm2, %v321_v48  ;;  %832 = vmatpush1.msk.msra.mxu1 %vm985_vm2, %v321_v48 }
  0xaf   : > { %v296_v49 = vpop.permute.xlu0 %295  ;;  %v292_v50 = vpop.permute.xlu1 %291 }
  0xb0   : > { %v299_v51 = vsel %vm297_vm11, %v294_v47, %v296_v49  ;;  %v298_v52 = vsel %vm297_vm11, %v292_v50, %v294_v47 }
  0xb1   : > { %514 = vmatprep.subr.mxu0 %v299_v51  ;;  %824 = vmatprep.subr.mxu1 %v299_v51 }
  0xb2   : > { %515 = vmatpush1.msra.mxu0 %v298_v52  ;;  %833 = vmatpush1.msra.mxu1 %v298_v52 }
  0xb3   : > { %814 = vmatprep.subr.msk.mxu0 %vm997_vm5, %v957_v5  ;;  %825 = vmatprep.subr.msk.mxu1 %vm997_vm5, %v957_v5 }
  0xb4   : > { %816 = vmatpush1.msk.msra.mxu0 %vm1007_vm6, %v959_v6  ;;  %834 = vmatpush1.msk.msra.mxu1 %vm1007_vm6, %v959_v6 }
  0xb5   : > { %785 = vmatmul.mubr.msk.f32.vlgmr.msra.gmra.mxu0 %vm473_vm12, %v451_v53  ;;  %787 = vmatmul.mubr.msk.f32.vlgmr.msra.gmra.mxu1 %vm473_vm12, %v453_v54 }
  0xb6   : > { %556 = vmatprep.mubr.f32.mxu0 %v903_v8  ;;  %568 = vmatprep.mubr.f32.mxu1 %v903_v8 }
  0xb9   : > { %786 = vmatmul.mubr.msk.f32.gmra.mxu0 %vm473_vm12, %v452_v55  ;;  %788 = vmatmul.mubr.msk.f32.gmra.mxu1 %vm473_vm12, %v454_v56 }
 0x175   : > { %v552_v57 = vpop.f32.mrf.mxu0  ;;  %v564_v58 = vpop.f32.mrf.mxu1 }
 0x177   : > { %v554_v59 = vpop.f32.mrf.mxu0  ;;  %v566_v60 = vpop.f32.mrf.mxu1 }
 0x178   : > { %v575_v61 = vadd.f32 %v554_v59, %v552_v57  ;;  %v581_v2 = vadd.f32 %v566_v60, %v564_v58 }
 0x179   : > { %v558_v62 = vpop.f32.mrf.mxu0  ;;  %v570_v63 = vpop.f32.mrf.mxu1 }
 0x17a   : > { %576 = vadd.xlane.f32.xlu0 %v575_v61 }
 0x17b   : > { %v560_v0 = vpop.f32.mrf.mxu0  ;;  %v572_v3 = vpop.f32.mrf.mxu1 }
 0x17c   : > { %v578_v1 = vadd.f32 %v560_v0, %v558_v62  ;;  %v584_v4 = vadd.f32 %v572_v3, %v570_v63 }
 0x17e   : > { %582 = vadd.xlane.f32.xlu0 %v581_v2  ;;  %579 = vadd.xlane.f32.xlu1 %v578_v1 }
 0x182   : > { %585 = vadd.xlane.f32.xlu0 %v584_v4 }
 0x203   : > { %v577_v5 = vpop.xlane.xlu0 %576 }
 0x204   : > { %v587_v6 = vmul.f32 0.00390625, %v577_v5  ;;  %620 = vst.msk [vmem:[%s228_s16] sm:$0xff] %vm619_vm13, %v577_v5 }
 0x206   : > { %v591_v7 = vsub.f32 %v552_v57, %v587_v6  ;;  %v592_v8 = vsub.f32 %v554_v59, %v587_v6 }
 0x207   : > { %v583_v9 = vpop.xlane.xlu0 %582  ;;  %v580_v10 = vpop.xlane.xlu1 %579 }
 0x208   : > { %v589_v11 = vmul.f32 0.00390625, %v583_v9  ;;  %622 = vst.msk [vmem:[%s228_s16 + $0x10] sm:$0xff] %vm619_vm13, %v583_v9  ;;  %v588_v12 = vmul.f32 0.00390625, %v580_v10  ;;  %621 = vst.msk [vmem:[%s228_s16 + $0x8] sm:$0xff] %vm619_vm13, %v580_v10  ;;  %v599_v13 = vmul.f32 %v591_v7, %v591_v7  ;;  %v600_v14 = vmul.f32 %v592_v8, %v592_v8 }
 0x20a   : > { %v595_v15 = vsub.f32 %v564_v58, %v589_v11  ;;  %v596_v16 = vsub.f32 %v566_v60, %v589_v11  ;;  %v593_v17 = vsub.f32 %v558_v62, %v588_v12  ;;  %v594_v18 = vsub.f32 %v560_v0, %v588_v12 }
 0x20b   : > { %v586_v19 = vpop.xlane.xlu0 %585  ;;  %v607_v20 = vadd.f32 %v600_v14, %v599_v13 }
 0x20c   : > { %v590_v21 = vmul.f32 0.00390625, %v586_v19  ;;  %623 = vst.msk [vmem:[%s228_s16 + $0x18] sm:$0xff] %vm619_vm13, %v586_v19  ;;  %v603_v22 = vmul.f32 %v595_v15, %v595_v15  ;;  %v604_v23 = vmul.f32 %v596_v16, %v596_v16  ;;  %v601_v24 = vmul.f32 %v593_v17, %v593_v17 }
 0x20d   : > { %608 = vadd.xlane.f32.xlu1 %v607_v20  ;;  %v602_v25 = vmul.f32 %v594_v18, %v594_v18 }
 0x20e   : > { %v597_v26 = vsub.f32 %v570_v63, %v590_v21  ;;  %v598_v27 = vsub.f32 %v572_v3, %v590_v21  ;;  %v613_v28 = vadd.f32 %v604_v23, %v603_v22 }
 0x20f   : > { %v610_v29 = vadd.f32 %v602_v25, %v601_v24 }
 0x210   : > { %v605_v30 = vmul.f32 %v597_v26, %v597_v26  ;;  %v606_v31 = vmul.f32 %v598_v27, %v598_v27 }
 0x211   : > { %614 = vadd.xlane.f32.xlu1 %v613_v28  ;;  %611 = vadd.xlane.f32.xlu0 %v610_v29 }
 0x212   : > { %v616_v32 = vadd.f32 %v606_v31, %v605_v30 }
 0x215   : > { %617 = vadd.xlane.f32.xlu0 %v616_v32 }
 0x296   : > { %v609_v33 = vpop.xlane.xlu1 %608 }
 0x297   : > { %624 = vst.msk [vmem:[%s238_s19] sm:$0xff] %vm619_vm13, %v609_v33 }
 0x29a   : > { %v612_v34 = vpop.xlane.xlu0 %611  ;;  %v615_v35 = vpop.xlane.xlu1 %614 }
 0x29b   : > { %625 = vst.msk [vmem:[%s238_s19 + $0x8] sm:$0xff] %vm619_vm13, %v612_v34  ;;  %626 = vst.msk [vmem:[%s238_s19 + $0x10] sm:$0xff] %vm619_vm13, %v615_v35 }
 0x29e   : > { %v618_v36 = vpop.xlane.xlu0 %617 }
 0x29f   : > { %627 = vst.msk [vmem:[%s238_s19 + $0x18] sm:$0xff] %vm619_vm13, %v618_v36 }
 0x2a0 PF: > { %s14_s14 = sadd.s32 1, %s895_s14   ;;  %s1105_s12 = smov %s891_s13 }
 0x2a1   : > { %p11_p5 = scmp.ge.s32.totalorder %s14_s14, 4   ;;  %s1106_s13 = smov %s1108_s15 }
 0x2a3   :  { %13 = sbr.rel (!%p11_p5) target bundleno = 2 (0x2), region = 77 }

// kernel: up_conv_forward.3
= control target key start
LH: loop header
LB: loop body
LE: loop exit
PB: predicated region body
PF: predicated region fallthrough
CT: control target
= control target key end

     0   :  { %s996_s15 = smov 0   ;;  %s998_s16 = smov 0   ;;  %s1186_s0 = inlined_call_operand.vmem [shape: f32[2,8,290], index: 0, kind: input, shape index: {}]   ;;  %s1187_s1 = inlined_call_operand.vmem [shape: f32[32,72], index: 1, kind: input, shape index: {}]   ;;  %s1188_s2 = inlined_call_operand.vmem [shape: f32[32,1], index: 2, kind: input, shape index: {}]   ;;  %s1189_s3 = inlined_call_operand.vmem [shape: f32[32,1], index: 3, kind: input, shape index: {}]   ;;  %s1190_s4 = inlined_call_operand.vmem [shape: f32[2,32,256], index: 4, kind: output, shape index: {}]  }
   0x1   :  { %s1000_s17 = smov 0  }
   0x2 LB: > { %s26_s18 = sadd.s32 1, %s955_s16  ;;  %p843_p0 = scmp.ge.s32.totalorder %s959_s17, 1  ;;  %s959_s17 = sphi %s1000_s17, %s14_s17   ;;  %s955_s16 = sphi %s998_s16, %s1200_s16   ;;  %s951_s15 = sphi %s996_s15, %s1199_s15  }
   0x3   : > { %p28_p1 = scmp.ge.s32.totalorder %s26_s18, 2  ;;  %p209_p2 = scmp.lt.s32.totalorder %s959_s17, 3 }
   0x5   : > { %s1202_s18 = smov (%p28_p1, %s26_s18), 0  ;;  %p210_p3 = pnand %p843_p0, %p209_p2 }
   0x6   : > { %p255_p4 = scmp.lt.s32.totalorder (!%p210_p3), %s951_s15, 1  ;;  %s961_s23 = smov (!%p210_p3), 94  }
   0x7   : > { %213 = sbr.rel (%p210_p3) target bundleno = 387 (0x183), region = 36  ;;  %s962_s24 = smov (!%p210_p3), 95  }
   0x8   : > { %s963_s25 = smov (!%p210_p3), 96   ;;  %s964_s26 = smov (!%p210_p3), 110  }
   0x9   : > { %s965_s27 = smov (!%p210_p3), 111   ;;  %s966_s28 = smov (!%p210_p3), 112  }
   0xa   : > { %s968_s29 = smov (!%p210_p3), 126   ;;  %s969_s30 = smov (!%p210_p3), 127  }
   0xc   : > { %v293_v0 = vlaneseq  ;;  %s1204_s15 = smov (!%p255_p4, %s951_s15), 1  ;;  %v967_v8 = vmov 0.0   ;;  %v970_v9 = vmov 0   ;;  %v624_v10 = vld [vmem:[%s1188_s2] sm:$0xff]  ;;  %v625_v11 = vld [vmem:[%s1188_s2 + $0x8] sm:$0xff]  ;;  %v627_v12 = vld [vmem:[%s1188_s2 + $0x18] sm:$0xff] }
   0xd   : > { %s896_s19 = smul.u32 24, %s1204_s15  ;;  %599 = vmatprep.mubr.f32.mxu0 %v967_v8  ;;  %611 = vmatprep.mubr.f32.mxu1 %v967_v8  ;;  %v626_v13 = vld [vmem:[%s1188_s2 + $0x10] sm:$0xff]  ;;  %v657_v14 = vld [vmem:[%s1189_s3 + $0x8] sm:$0xff]  ;;  %v656_v15 = vld [vmem:[%s1189_s3] sm:$0xff]  ;;  %vm491_vm0 = vcmask 769024   ;;  %vm472_vm3 = vcmask 777216  }
   0xe   : > { %v1016_v1 = vand.u32 127, %v293_v0  ;;  %936 = vset.pattern.permute.xlu1 %v970_v9  ;;  %935 = vset.pattern.permute.xlu0 %v970_v9  ;;  %v659_v16 = vld [vmem:[%s1189_s3 + $0x18] sm:$0xff]  ;;  %v658_v17 = vld [vmem:[%s1189_s3 + $0x10] sm:$0xff]  ;;  %vm451_vm4 = vcmask 785408   ;;  %vm430_vm7 = vcmask 900096   ;;  %vm411_vm8 = vcmask 908288  }
   0xf   : > { %s259_s22 = scalar_lea.vmem %s1186_s0, %s896_s19  ;;  %vm390_vm9 = vcmask 916480   ;;  %vm369_vm10 = vcmask 1031168   ;;  %vm346_vm11 = vcmask 1039360   ;;  %v500_v62 = vld [vmem:[%s1187_s1] sm:$0xff]  ;;  %vm522_vm12 = vcmask 588800   ;;  %v502_v63 = vld [vmem:[%s1187_s1 + $0x10] sm:$0xff] }
  0x10   : > { %v1020_v2 = vadd.s32 128, %v1016_v1  ;;  %v300_v3 = vand.u32 15, %v1016_v1  ;;  %v1027_v5 = vld [vmem:[%s259_s22 + $0x8] sm:$0xff]  ;;  %v1029_v6 = vld [vmem:[%s259_s22] sm:$0xff]  ;;  %v481_v7 = vld [vmem:[%s259_s22 + $0x10] sm:$0xff]  ;;  %s853_s7 = sshll.u32 %s1204_s15, 6 }
  0x11   : > { %487 = vrot.lane.b32.xlu0 %v1027_v5, %s961_s23  ;;  %485 = vrot.lane.b32.xlu1 %v1029_v6, %s961_s23  ;;  %v501_v0 = vld [vmem:[%s1187_s1 + $0x8] sm:$0xff]  ;;  %v503_v1 = vld [vmem:[%s1187_s1 + $0x18] sm:$0xff]  ;;  %s1167_s10 = scalar_lea.vmem %s1190_s4, %s853_s7 }
  0x12   : > { %v307_v4 = vand.u32 15, %v1020_v2  ;;  %vm1081_vm2 = vcmp.ne.s32.totalorder %v300_v3, 15  ;;  %vm1105_vm6 = vcmp.ne.s32.totalorder %v300_v3, 0 }
  0x14   : > { %vm1075_vm1 = vcmp.ne.s32.totalorder %v307_v4, 15  ;;  %vm1095_vm5 = vcmp.ne.s32.totalorder %v307_v4, 0 }
  0x15   : > { %489 = vrot.lane.b32.xlu0 %v481_v7, %s961_s23  ;;  %468 = vrot.lane.b32.xlu1 %v1027_v5, %s962_s24 }
  0x19   : > { %470 = vrot.lane.b32.xlu0 %v481_v7, %s962_s24  ;;  %466 = vrot.lane.b32.xlu1 %v1029_v6, %s962_s24 }
  0x1d   : > { %449 = vrot.lane.b32.xlu1 %v481_v7, %s963_s25  ;;  %447 = vrot.lane.b32.xlu0 %v1027_v5, %s963_s25 }
  0x21   : > { %445 = vrot.lane.b32.xlu0 %v1029_v6, %s963_s25  ;;  %426 = vrot.lane.b32.xlu1 %v1027_v5, %s964_s26 }
  0x25   : > { %428 = vrot.lane.b32.xlu0 %v481_v7, %s964_s26  ;;  %424 = vrot.lane.b32.xlu1 %v1029_v6, %s964_s26 }
  0x29   : > { %409 = vrot.lane.b32.xlu1 %v481_v7, %s965_s27  ;;  %407 = vrot.lane.b32.xlu0 %v1027_v5, %s965_s27 }
  0x2d   : > { %405 = vrot.lane.b32.xlu0 %v1029_v6, %s965_s27  ;;  %386 = vrot.lane.b32.xlu1 %v1027_v5, %s966_s28 }
  0x31   : > { %388 = vrot.lane.b32.xlu0 %v481_v7, %s966_s28  ;;  %384 = vrot.lane.b32.xlu1 %v1029_v6, %s966_s28 }
  0x35   : > { %367 = vrot.lane.b32.xlu1 %v481_v7, %s968_s29  ;;  %365 = vrot.lane.b32.xlu0 %v1027_v5, %s968_s29 }
  0x39   : > { %363 = vrot.lane.b32.xlu0 %v1029_v6, %s968_s29  ;;  %342 = vrot.lane.b32.xlu1 %v1027_v5, %s969_s30 }
  0x3d   : > { %344 = vrot.lane.b32.xlu0 %v481_v7, %s969_s30  ;;  %340 = vrot.lane.b32.xlu1 %v1029_v6, %s969_s30 }
  0x41   : > { %630 = vperm.xlu0 %935, %v624_v10   ;;  %635 = vperm.xlu1 %936, %v625_v11  }
  0x45   : > { %645 = vperm.xlu0 %935, %v627_v12   ;;  %640 = vperm.xlu1 %936, %v626_v13  }
  0x49   : > { %667 = vperm.xlu0 %935, %v657_v14   ;;  %662 = vperm.xlu1 %936, %v656_v15  }
  0x4d   : > { %677 = vperm.xlu0 %935, %v659_v16   ;;  %672 = vperm.xlu1 %936, %v658_v17  }
  0x83   : > { %v488_v18 = vpop.permute.xlu0 %487  ;;  %v486_v19 = vpop.permute.xlu1 %485 }
  0x84   : > { %v492_v25 = vsel %vm491_vm0, %v486_v19, %v488_v18 }
  0x87   : > { %v490_v21 = vpop.permute.xlu0 %489  ;;  %v469_v22 = vpop.permute.xlu1 %468 }
  0x88   : > { %v493_v24 = vsel %vm491_vm0, %v488_v18, %v490_v21 }
  0x89   : > { %855 = vmatprep.subr.msk.mxu0 %vm1075_vm1, %v493_v24  ;;  %878 = vmatprep.subr.msk.mxu1 %vm1075_vm1, %v493_v24 }
  0x8a   : > { %857 = vmatpush1.msk.msra.mxu0 %vm1081_vm2, %v492_v25  ;;  %887 = vmatpush1.msk.msra.mxu1 %vm1081_vm2, %v492_v25 }
  0x8b   : > { %v471_v26 = vpop.permute.xlu0 %470  ;;  %v467_v27 = vpop.permute.xlu1 %466 }
  0x8c   : > { %v474_v28 = vsel %vm472_vm3, %v469_v22, %v471_v26  ;;  %v473_v29 = vsel %vm472_vm3, %v467_v27, %v469_v22 }
  0x8d   : > { %551 = vmatprep.subr.mxu0 %v474_v28  ;;  %879 = vmatprep.subr.mxu1 %v474_v28 }
  0x8e   : > { %552 = vmatpush1.msra.mxu0 %v473_v29  ;;  %888 = vmatpush1.msra.mxu1 %v473_v29 }
  0x8f   : > { %v450_v31 = vpop.permute.xlu1 %449  ;;  %v448_v32 = vpop.permute.xlu0 %447 }
  0x90   : > { %v453_v33 = vsel %vm451_vm4, %v448_v32, %v450_v31 }
  0x91   : > { %859 = vmatprep.subr.msk.mxu0 %vm1095_vm5, %v453_v33  ;;  %880 = vmatprep.subr.msk.mxu1 %vm1095_vm5, %v453_v33 }
  0x93   : > { %v446_v35 = vpop.permute.xlu0 %445  ;;  %v427_v36 = vpop.permute.xlu1 %426 }
  0x94   : > { %v452_v37 = vsel %vm451_vm4, %v446_v35, %v448_v32 }
  0x95   : > { %861 = vmatpush1.msk.msra.mxu0 %vm1105_vm6, %v452_v37  ;;  %889 = vmatpush1.msk.msra.mxu1 %vm1105_vm6, %v452_v37 }
  0x97   : > { %v429_v38 = vpop.permute.xlu0 %428  ;;  %v425_v39 = vpop.permute.xlu1 %424 }
  0x98   : > { %v432_v40 = vsel %vm430_vm7, %v427_v36, %v429_v38  ;;  %v431_v41 = vsel %vm430_vm7, %v425_v39, %v427_v36 }
  0x99   : > { %863 = vmatprep.subr.msk.mxu0 %vm1075_vm1, %v432_v40  ;;  %881 = vmatprep.subr.msk.mxu1 %vm1075_vm1, %v432_v40 }
  0x9a   : > { %865 = vmatpush1.msk.msra.mxu0 %vm1081_vm2, %v431_v41  ;;  %890 = vmatpush1.msk.msra.mxu1 %vm1081_vm2, %v431_v41 }
  0x9b   : > { %v410_v42 = vpop.permute.xlu1 %409  ;;  %v408_v43 = vpop.permute.xlu0 %407 }
  0x9c   : > { %v413_v44 = vsel %vm411_vm8, %v408_v43, %v410_v42 }
  0x9d   : > { %557 = vmatprep.subr.mxu0 %v413_v44  ;;  %882 = vmatprep.subr.mxu1 %v413_v44 }
  0x9f   : > { %v406_v45 = vpop.permute.xlu0 %405  ;;  %v387_v46 = vpop.permute.xlu1 %386 }
  0xa0   : > { %v412_v47 = vsel %vm411_vm8, %v406_v45, %v408_v43 }
  0xa1   : > { %558 = vmatpush1.msra.mxu0 %v412_v47  ;;  %891 = vmatpush1.msra.mxu1 %v412_v47 }
  0xa3   : > { %v389_v48 = vpop.permute.xlu0 %388  ;;  %v385_v49 = vpop.permute.xlu1 %384 }
  0xa4   : > { %v392_v50 = vsel %vm390_vm9, %v387_v46, %v389_v48  ;;  %v391_v51 = vsel %vm390_vm9, %v385_v49, %v387_v46 }
  0xa5   : > { %867 = vmatprep.subr.msk.mxu0 %vm1095_vm5, %v392_v50  ;;  %883 = vmatprep.subr.msk.mxu1 %vm1095_vm5, %v392_v50 }
  0xa6   : > { %869 = vmatpush1.msk.msra.mxu0 %vm1105_vm6, %v391_v51  ;;  %892 = vmatpush1.msk.msra.mxu1 %vm1105_vm6, %v391_v51 }
  0xa7   : > { %v368_v52 = vpop.permute.xlu1 %367  ;;  %v366_v53 = vpop.permute.xlu0 %365 }
  0xa8   : > { %v371_v54 = vsel %vm369_vm10, %v366_v53, %v368_v52 }
  0xa9   : > { %871 = vmatprep.subr.msk.mxu0 %vm1075_vm1, %v371_v54  ;;  %884 = vmatprep.subr.msk.mxu1 %vm1075_vm1, %v371_v54 }
  0xab   : > { %v364_v55 = vpop.permute.xlu0 %363  ;;  %v343_v56 = vpop.permute.xlu1 %342 }
  0xac   : > { %v370_v57 = vsel %vm369_vm10, %v364_v55, %v366_v53 }
  0xad   : > { %873 = vmatpush1.msk.msra.mxu0 %vm1081_vm2, %v370_v57  ;;  %893 = vmatpush1.msk.msra.mxu1 %vm1081_vm2, %v370_v57 }
  0xaf   : > { %v345_v58 = vpop.permute.xlu0 %344  ;;  %v341_v59 = vpop.permute.xlu1 %340 }
  0xb0   : > { %v348_v60 = vsel %vm346_vm11, %v343_v56, %v345_v58  ;;  %v347_v61 = vsel %vm346_vm11, %v341_v59, %v343_v56 }
  0xb1   : > { %563 = vmatprep.subr.mxu0 %v348_v60  ;;  %885 = vmatprep.subr.mxu1 %v348_v60 }
  0xb2   : > { %564 = vmatpush1.msra.mxu0 %v347_v61  ;;  %894 = vmatpush1.msra.mxu1 %v347_v61 }
  0xb3   : > { %875 = vmatprep.subr.msk.mxu0 %vm1095_vm5, %v1027_v5  ;;  %886 = vmatprep.subr.msk.mxu1 %vm1095_vm5, %v1027_v5 }
  0xb4   : > { %877 = vmatpush1.msk.msra.mxu0 %vm1105_vm6, %v1029_v6  ;;  %895 = vmatpush1.msk.msra.mxu1 %vm1105_vm6, %v1029_v6 }
  0xb5   : > { %847 = vmatmul.mubr.msk.f32.vlgmr.msra.gmra.mxu0 %vm522_vm12, %v500_v62  ;;  %849 = vmatmul.mubr.msk.f32.vlgmr.msra.gmra.mxu1 %vm522_vm12, %v502_v63 }
  0xb6   : > { %605 = vmatprep.mubr.f32.mxu0 %v967_v8  ;;  %617 = vmatprep.mubr.f32.mxu1 %v967_v8 }
  0xb9   : > { %848 = vmatmul.mubr.msk.f32.gmra.mxu0 %vm522_vm12, %v501_v0  ;;  %850 = vmatmul.mubr.msk.f32.gmra.mxu1 %vm522_vm12, %v503_v1 }
  0xbc   : > { %v636_v2 = vpop.permute.xlu1 %635  ;;  %v631_v3 = vpop.permute.xlu0 %630 }
  0xc0   : > { %v641_v4 = vpop.permute.xlu1 %640  ;;  %v646_v5 = vpop.permute.xlu0 %645 }
  0xc4   : > { %v663_v6 = vpop.permute.xlu1 %662  ;;  %v668_v10 = vpop.permute.xlu0 %667 }
  0xc8   : > { %v673_v11 = vpop.permute.xlu1 %672  ;;  %v678_v29 = vpop.permute.xlu0 %677 }
 0x175   : > { %v601_v7 = vpop.f32.mrf.mxu0  ;;  %v613_v9 = vpop.f32.mrf.mxu1 }
 0x176   : > { %v648_v8 = vmul.f32 %v631_v3, %v601_v7  ;;  %v652_v12 = vmul.f32 %v641_v4, %v613_v9 }
 0x177   : > { %v603_v13 = vpop.f32.mrf.mxu0  ;;  %v615_v14 = vpop.f32.mrf.mxu1 }
 0x178   : > { %v680_v15 = vadd.f32 %v663_v6, %v648_v8  ;;  %v684_v16 = vadd.f32 %v673_v11, %v652_v12  ;;  %v649_v17 = vmul.f32 %v631_v3, %v603_v13  ;;  %v653_v18 = vmul.f32 %v641_v4, %v615_v14 }
 0x179   : > { %v607_v19 = vpop.f32.mrf.mxu0  ;;  %v619_v20 = vpop.f32.mrf.mxu1 }
 0x17a   : > { %v688_v21 = vmax.f32 %v680_v15, 0.0  ;;  %v692_v22 = vmax.f32 %v684_v16, 0.0  ;;  %v681_v23 = vadd.f32 %v663_v6, %v649_v17  ;;  %v685_v24 = vadd.f32 %v673_v11, %v653_v18 }
 0x17b   : > { %v650_v25 = vmul.f32 %v636_v2, %v607_v19  ;;  %v654_v26 = vmul.f32 %v646_v5, %v619_v20  ;;  %v609_v27 = vpop.f32.mrf.mxu0  ;;  %v621_v28 = vpop.f32.mrf.mxu1 }
 0x17c   : > { %696 = vst [vmem:[%s1167_s10] sm:$0xff] %v688_v21  ;;  %700 = vst [vmem:[%s1167_s10 + $0x20] sm:$0xff] %v692_v22  ;;  %v689_v30 = vmax.f32 %v681_v23, 0.0  ;;  %v693_v31 = vmax.f32 %v685_v24, 0.0  ;;  %v651_v32 = vmul.f32 %v636_v2, %v609_v27  ;;  %v655_v33 = vmul.f32 %v646_v5, %v621_v28 }
 0x17d   : > { %v682_v34 = vadd.f32 %v668_v10, %v650_v25  ;;  %v686_v35 = vadd.f32 %v678_v29, %v654_v26 }
 0x17e   : > { %697 = vst [vmem:[%s1167_s10 + $0x8] sm:$0xff] %v689_v30  ;;  %701 = vst [vmem:[%s1167_s10 + $0x28] sm:$0xff] %v693_v31  ;;  %v683_v36 = vadd.f32 %v668_v10, %v651_v32  ;;  %v687_v37 = vadd.f32 %v678_v29, %v655_v33 }
 0x17f   : > { %v690_v38 = vmax.f32 %v682_v34, 0.0  ;;  %v694_v39 = vmax.f32 %v686_v35, 0.0 }
 0x180   : > { %v691_v40 = vmax.f32 %v683_v36, 0.0  ;;  %v695_v41 = vmax.f32 %v687_v37, 0.0 }
 0x181   : > { %698 = vst [vmem:[%s1167_s10 + $0x10] sm:$0xff] %v690_v38  ;;  %702 = vst [vmem:[%s1167_s10 + $0x30] sm:$0xff] %v694_v39 }
 0x182   : > { %699 = vst [vmem:[%s1167_s10 + $0x18] sm:$0xff] %v691_v40  ;;  %703 = vst [vmem:[%s1167_s10 + $0x38] sm:$0xff] %v695_v41 }
 0x183 PF: > { %s14_s17 = sadd.s32 1, %s959_s17   ;;  %s1199_s15 = smov %s955_s16 }
 0x184   : > { %p11_p5 = scmp.ge.s32.totalorder %s14_s17, 4   ;;  %s1200_s16 = smov %s1202_s18 }
 0x186   :  { %13 = sbr.rel (!%p11_p5) target bundleno = 2 (0x2), region = 79 }

</bundles_post_ra>
